<compile_context>
chip_gen: v7x
topology: tpu7x:2x2x1
jax: 0.10.0
libtpu: 0.0.40
codegen_flags: <defaults>
</compile_context>

<pallas_src>
import jax
import jax.numpy as jnp
from jax.experimental import pallas as pl
from jax.experimental.pallas import tpu as pltpu


def _pad_to(n, m):
    return ((n + m - 1) // m) * m


def actor_critic_kernel(x_ref, w1_ref, b1_ref, w2_ref, b2_ref, out_ref):
    A_pad = (out_ref.shape[-1] - 128) // 2

    x = x_ref[...]                                                    # [N, D]

    # ---- fused layer 1: one matmul for all three heads ----------------------
    h = jnp.dot(x, w1_ref[...], preferred_element_type=jnp.float32) + b1_ref[...]
    h = jnp.maximum(h, 0.0)                                           # [N, H_pad]

    # ---- fused layer 2: one block matmul; mask already folded into b2 -------
    # column layout of y: [0:A_pad)        raw xfer logits
    #                     [A_pad:2*A_pad)  mask-biased xfer logits
    #                     [2*A_pad]        node logits
    #                     [2*A_pad+1]      values   (rest of last 128 lanes = 0)
    y = jnp.dot(h, w2_ref[...], preferred_element_type=jnp.float32) + b2_ref[...]
    xl = y[:, 0:A_pad]                                                # [N, A_pad]
    xlm = y[:, A_pad:2 * A_pad]                                       # [N, A_pad]
    small = y[:, 2 * A_pad:2 * A_pad + 128]                           # [N, 128]
    nl = small[:, 0:1]                                                # [N, 1]

    # ---- softmax over the node axis (PyTorch: softmax(node_logits, dim=-1)) -
    # Exact reciprocal: the denominator is a single scalar (review concern).
    m = jnp.max(nl, axis=0, keepdims=True)
    e = jnp.exp(nl - m)
    node_probs = e / jnp.sum(e, axis=0, keepdims=True)

    # ---- masked softmax over the xfer axis (mask bias came from the matmul) -
    mm = jnp.max(xlm, axis=-1, keepdims=True)
    ee = jnp.exp(xlm - mm)
    xfer_probs = ee * pl.reciprocal(jnp.sum(ee, axis=-1, keepdims=True), approx=True)

    # ---- small slab: lane0 = node_logits, lane1 = values (from the matmul);
    #      insert node_probs at lane 2 with one compare + one select ----------
    lane = jax.lax.broadcasted_iota(jnp.int32, small.shape, 1)
    small = jnp.where(lane == 2, node_probs, small)

    # Lane-dense, 128-aligned stores.  (v5e note: with a future node grid and
    # large tiles, prefer assembling one contiguous [tile, 2*A_pad+128] store.)
    out_ref[:, 0:A_pad] = xl
    out_ref[:, A_pad:2 * A_pad] = xfer_probs
    out_ref[:, 2 * A_pad:] = small


def fuse_params(p):
    """Fuse the three heads into one layer-1 weight and one block layer-2
    weight (plus fused biases).  Call ONCE per parameter set and cache the
    result; only the mask-dependent layer-2 bias is rebuilt per forward.

    Layout:
      w1f [D, H_pad]           hidden cols [0:16]=actor_node, [16:48]=actor_xfer,
                               [48:80]=critic        (H_pad = pad(H, 8) = 80)
      w2f [H_pad, 2*A_pad+128] cols [0:A]         = xfer logits
                                    [A_pad:A_pad+A]= xfer logits (masked copy)
                                    [2*A_pad]      = node logits
                                    [2*A_pad+1]    = values
    """
    D = p["an_w1"].shape[0]
    H1 = p["an_w1"].shape[1]       # graph_embed_size // 2
    H2 = p["ax_w1"].shape[1]       # actor_hidden_size
    H3 = p["cr_w1"].shape[1]       # critic_hidden_size
    A = p["ax_w2"].shape[1]        # action_dim
    H = H1 + H2 + H3
    H_pad = _pad_to(H, 8)          # 80, not 128: no pure-zero weight DMA
    A_pad = _pad_to(A, 128)
    C = 2 * A_pad + 128

    w1 = jnp.zeros((D, H_pad), jnp.float32)
    w1 = w1.at[:, 0:H1].set(p["an_w1"])
    w1 = w1.at[:, H1:H1 + H2].set(p["ax_w1"])
    w1 = w1.at[:, H1 + H2:H].set(p["cr_w1"])
    b1 = jnp.zeros((1, H_pad), jnp.float32)
    b1 = b1.at[:, 0:H1].set(p["an_b1"])
    b1 = b1.at[:, H1:H1 + H2].set(p["ax_b1"])
    b1 = b1.at[:, H1 + H2:H].set(p["cr_b1"])

    w2 = jnp.zeros((H_pad, C), jnp.float32)
    w2 = w2.at[H1:H1 + H2, 0:A].set(p["ax_w2"])               # raw xfer block
    w2 = w2.at[H1:H1 + H2, A_pad:A_pad + A].set(p["ax_w2"])   # masked copy
    w2 = w2.at[0:H1, 2 * A_pad:2 * A_pad + 1].set(p["an_w2"])
    w2 = w2.at[H1 + H2:H, 2 * A_pad + 1:2 * A_pad + 2].set(p["cr_w2"])
    b2 = jnp.zeros((1, C), jnp.float32)
    b2 = b2.at[:, 0:A].set(p["ax_b2"])
    b2 = b2.at[:, A_pad:A_pad + A].set(p["ax_b2"])
    b2 = b2.at[:, 2 * A_pad:2 * A_pad + 1].set(p["an_b2"])
    b2 = b2.at[:, 2 * A_pad + 1:2 * A_pad + 2].set(p["cr_b2"])
    return w1, b1, w2, b2


@jax.jit
def actor_critic_forward(x, w1f, b1f, w2f, b2f, mask):
    """x: [N, D] node embeddings; mask: [1, A] float {0,1}
    (1.0 = xfer available; broadcast over all nodes, as in the original glue).
    Fused weights come from fuse_params() called once outside this function."""
    N = x.shape[0]
    A = mask.shape[-1]
    A_pad = _pad_to(A, 128)
    out_w = w2f.shape[-1]                      # == 2 * A_pad + 128

    # Mask -> additive bias folded into the per-call layer-2 bias.  Padded
    # lanes get -2e10 so they stay strictly below fully-masked real lanes
    # (only matters when A is not a multiple of 128 and a mask row is empty).
    mbias = jnp.full((1, A_pad), -2e10, jnp.float32)
    mbias = mbias.at[:, 0:A].set(jnp.where(mask > 0, 0.0, -1e10))
    b2_call = b2f + jnp.pad(mbias, ((0, 0), (A_pad, 128)))

    vmem = pl.BlockSpec(memory_space=pltpu.MemorySpace.VMEM)

    # Gridless (whole X resident): fine up to thousands of node rows.
    # TODO(synk): for very large N, add a node grid (BlockSpec((TILE_N, D)))
    #             with a 2-pass / online node-axis softmax, mark the node axis
    #             "parallel" (v7x 2 TCs), size TILE_N against v7x's 64 MiB
    #             VMEM, and cast x/weights to bf16 (f32 accumulate) on v6e/v7x.
    out = pl.pallas_call(
        actor_critic_kernel,
        out_shape=jax.ShapeDtypeStruct((N, out_w), jnp.float32),
        in_specs=[vmem] * 5,
        out_specs=vmem,
    )(x, w1f, b1f, w2f, b2_call)

    xfer_logits = out[:, 0:A]
    xfer_probs = out[:, A_pad:A_pad + A]
    node_logits = out[:, 2 * A_pad:2 * A_pad + 1]
    values = out[:, 2 * A_pad + 1:2 * A_pad + 2]
    node_probs = out[:, 2 * A_pad + 2:2 * A_pad + 3]
    return node_logits, node_probs, xfer_logits, xfer_probs, values


def init_params(key, graph_embed_size, actor_hidden_size, critic_hidden_size, action_dim):
    """Deterministic synthetic init; weights stored as [in, out]."""
    def linear(k, fan_in, fan_out):
        kw, kb = jax.random.split(k)
        bound = 1.0 / jnp.sqrt(fan_in)
        w = jax.random.uniform(kw, (fan_in, fan_out), jnp.float32, -bound, bound)
        b = jax.random.uniform(kb, (1, fan_out), jnp.float32, -bound, bound)
        return w, b

    ks = jax.random.split(key, 6)
    p = {}
    p["an_w1"], p["an_b1"] = linear(ks[0], graph_embed_size, graph_embed_size // 2)
    p["an_w2"], p["an_b2"] = linear(ks[1], graph_embed_size // 2, 1)
    p["ax_w1"], p["ax_b1"] = linear(ks[2], graph_embed_size, actor_hidden_size)
    p["ax_w2"], p["ax_b2"] = linear(ks[3], actor_hidden_size, action_dim)
    p["cr_w1"], p["cr_b1"] = linear(ks[4], graph_embed_size, critic_hidden_size)
    p["cr_w2"], p["cr_b2"] = linear(ks[5], critic_hidden_size, 1)
    return p


def reference_forward(x, p, mask):
    """Plain-JAX reference with the ORIGINAL (unfused) weights, mirroring the
    PyTorch semantics — verifies the fused/packed kernel end to end."""
    h = jnp.maximum(x @ p["an_w1"] + p["an_b1"], 0.0)
    nl = h @ p["an_w2"] + p["an_b2"]
    np_ = jax.nn.softmax(nl, axis=0)
    h2 = jnp.maximum(x @ p["ax_w1"] + p["ax_b1"], 0.0)
    xl = h2 @ p["ax_w2"] + p["ax_b2"]
    xp = jax.nn.softmax(xl - (1.0 - mask) * 1e10, axis=-1)
    h3 = jnp.maximum(x @ p["cr_w1"] + p["cr_b1"], 0.0)
    v = h3 @ p["cr_w2"] + p["cr_b2"]
    return nl, np_, xl, xp, v


if __name__ == "__main__":
    # Small synthetic shapes consistent with the module.  N=128 node rows per
    # call (review: batch rows so the launch + weight DMA cost amortizes).
    N = 128
    graph_embed_size = 32
    actor_hidden_size = 32
    critic_hidden_size = 32
    action_dim = 128         # context.num_xfers

    key = jax.random.PRNGKey(0)
    k_emb, k_par = jax.random.split(key)

    # Precomputed node embeddings standing in for QGNN(dgl_graph).
    x = jax.random.normal(k_emb, (N, graph_embed_size), jnp.float32)

    params = init_params(k_par, graph_embed_size, actor_hidden_size,
                         critic_hidden_size, action_dim)

    # Hoisted out of the per-call path: fuse once, reuse for every forward.
    w1f, b1f, w2f, b2f = jax.block_until_ready(fuse_params(params))

    # Deterministic availability mask (1.0 = xfer available).
    mask = jnp.zeros((1, action_dim), jnp.float32)
    mask = mask.at[0, 0:10].set(1.0).at[0, 64:80].set(1.0)

    outs = actor_critic_forward(x, w1f, b1f, w2f, b2f, mask)
    outs = jax.block_until_ready(outs)
    node_logits, node_probs, xfer_logits, xfer_probs, values = outs

    # Check against a plain-JAX reference using the ORIGINAL weights.
    refs = reference_forward(x, params, mask)
    tols = [(1e-5, 1e-5),   # node_logits
            (1e-4, 1e-5),   # node_probs   (exact reciprocal)
            (1e-5, 1e-5),   # xfer_logits
            (1e-3, 1e-3),   # xfer_probs   (approx EUP reciprocal)
            (1e-5, 1e-5)]   # values
    for (got, want), (rtol, atol) in zip(zip(outs, refs), tols):
        assert got.shape == want.shape
        assert jnp.allclose(got, want, rtol=rtol, atol=atol), "mismatch vs reference"

    # Glue mirroring act(): sample node / xfer from the kernel-produced probs.
    k_node, k_xfer = jax.random.split(jax.random.PRNGKey(1))
    node = jax.random.categorical(k_node, jnp.log(node_probs[:, 0]))
    node_logprob = jnp.log(node_probs[node, 0])
    xfer = jax.random.categorical(k_xfer, jnp.log(xfer_probs[node]))
    xfer_logprob = jnp.log(xfer_probs[node, xfer])
    jax.block_until_ready((node, node_logprob, xfer, xfer_logprob, values))

    print("KERNEL_OK")
</pallas_src>

<mosaic_0001>
module attributes {stable_mosaic.version = 11 : i64} {
  func.func @actor_critic_kernel(%arg0: memref<128x32xf32, #tpu.memory_space<vmem>>, %arg1: memref<32x80xf32, #tpu.memory_space<vmem>>, %arg2: memref<1x80xf32, #tpu.memory_space<vmem>>, %arg3: memref<80x384xf32, #tpu.memory_space<vmem>>, %arg4: memref<1x384xf32, #tpu.memory_space<vmem>>, %arg5: memref<128x384xf32, #tpu.memory_space<vmem>>) attributes {dimension_semantics = [], scalar_prefetch = 0 : i64, scratch_operands = 0 : i64, tpu.core_type = #tpu.core_type<tc>} {
    %c0 = arith.constant 0 : index
    %c0_0 = arith.constant 0 : index
    %0 = vector.load %arg0[%c0, %c0_0] : memref<128x32xf32, #tpu.memory_space<vmem>>, vector<128x32xf32>
    %c0_1 = arith.constant 0 : index
    %c0_2 = arith.constant 0 : index
    %1 = vector.load %arg1[%c0_1, %c0_2] : memref<32x80xf32, #tpu.memory_space<vmem>>, vector<32x80xf32>
    %cst = arith.constant dense<0.000000e+00> : vector<128x80xf32>
    %2 = tpu.matmul %0, %1, %cst {dimension_numbers = #tpu.dot_dimension_numbers<[1], [0], [0], [1], [0, 0, 1, 1], [], []>} : vector<128x32xf32>, vector<32x80xf32>, vector<128x80xf32> -> vector<128x80xf32>
    %c0_3 = arith.constant 0 : index
    %c0_4 = arith.constant 0 : index
    %3 = vector.load %arg2[%c0_3, %c0_4] : memref<1x80xf32, #tpu.memory_space<vmem>>, vector<1x80xf32>
    %4 = vector.broadcast %3 : vector<1x80xf32> to vector<128x80xf32>
    %5 = arith.addf %2, %4 : vector<128x80xf32>
    %cst_5 = arith.constant 0.000000e+00 : f32
    %6 = vector.broadcast %cst_5 : f32 to vector<128x80xf32>
    %7 = arith.maximumf %5, %6 : vector<128x80xf32>
    %c0_6 = arith.constant 0 : index
    %c0_7 = arith.constant 0 : index
    %8 = vector.load %arg3[%c0_6, %c0_7] : memref<80x384xf32, #tpu.memory_space<vmem>>, vector<80x384xf32>
    %cst_8 = arith.constant dense<0.000000e+00> : vector<128x384xf32>
    %9 = tpu.matmul %7, %8, %cst_8 {dimension_numbers = #tpu.dot_dimension_numbers<[1], [0], [0], [1], [0, 0, 1, 1], [], []>} : vector<128x80xf32>, vector<80x384xf32>, vector<128x384xf32> -> vector<128x384xf32>
    %c0_9 = arith.constant 0 : index
    %c0_10 = arith.constant 0 : index
    %10 = vector.load %arg4[%c0_9, %c0_10] : memref<1x384xf32, #tpu.memory_space<vmem>>, vector<1x384xf32>
    %11 = vector.broadcast %10 : vector<1x384xf32> to vector<128x384xf32>
    %12 = arith.addf %9, %11 : vector<128x384xf32>
    %13 = vector.extract_strided_slice %12 {offsets = [0, 0], sizes = [128, 128], strides = [1, 1]} : vector<128x384xf32> to vector<128x128xf32>
    %14 = vector.extract_strided_slice %12 {offsets = [0, 128], sizes = [128, 128], strides = [1, 1]} : vector<128x384xf32> to vector<128x128xf32>
    %15 = vector.extract_strided_slice %12 {offsets = [0, 256], sizes = [128, 128], strides = [1, 1]} : vector<128x384xf32> to vector<128x128xf32>
    %16 = vector.extract_strided_slice %15 {offsets = [0, 0], sizes = [128, 1], strides = [1, 1]} : vector<128x128xf32> to vector<128x1xf32>
    %cst_11 = arith.constant dense<0xFF800000> : vector<1xf32>
    %17 = vector.multi_reduction <maximumf>, %16, %cst_11 [0] : vector<128x1xf32> to vector<1xf32>
    %18 = vector.shape_cast %17 : vector<1xf32> to vector<1x1xf32>
    %19 = vector.broadcast %18 : vector<1x1xf32> to vector<128x1xf32>
    %20 = arith.subf %16, %19 : vector<128x1xf32>
    %21 = math.exp %20 : vector<128x1xf32>
    %cst_12 = arith.constant dense<0.000000e+00> : vector<1xf32>
    %22 = vector.multi_reduction <add>, %21, %cst_12 [0] : vector<128x1xf32> to vector<1xf32>
    %23 = vector.shape_cast %22 : vector<1xf32> to vector<1x1xf32>
    %24 = vector.broadcast %23 : vector<1x1xf32> to vector<128x1xf32>
    %25 = arith.divf %21, %24 : vector<128x1xf32>
    %cst_13 = arith.constant dense<0xFF800000> : vector<128xf32>
    %26 = vector.multi_reduction <maximumf>, %14, %cst_13 [1] : vector<128x128xf32> to vector<128xf32>
    %27 = vector.shape_cast %26 : vector<128xf32> to vector<128x1xf32>
    %28 = vector.broadcast %27 : vector<128x1xf32> to vector<128x128xf32>
    %29 = arith.subf %14, %28 : vector<128x128xf32>
    %30 = math.exp %29 : vector<128x128xf32>
    %cst_14 = arith.constant dense<0.000000e+00> : vector<128xf32>
    %31 = vector.multi_reduction <add>, %30, %cst_14 [1] : vector<128x128xf32> to vector<128xf32>
    %32 = vector.shape_cast %31 : vector<128xf32> to vector<128x1xf32>
    %33 = tpu.reciprocal %32 {approx = true} : vector<128x1xf32> -> vector<128x1xf32>
    %34 = vector.broadcast %33 : vector<128x1xf32> to vector<128x128xf32>
    %35 = arith.mulf %30, %34 : vector<128x128xf32>
    %36 = tpu.iota {dimensions = array<i32: 1>} : vector<128x128xi32>
    %c2_i32 = arith.constant 2 : i32
    %37 = vector.broadcast %c2_i32 : i32 to vector<128x128xi32>
    %38 = arith.cmpi eq, %36, %37 : vector<128x128xi32>
    %39 = vector.shape_cast %25 : vector<128x1xf32> to vector<128x1xf32>
    %40 = vector.broadcast %39 : vector<128x1xf32> to vector<128x128xf32>
    %41 = arith.select %38, %40, %15 : vector<128x128xi1>, vector<128x128xf32>
    %c0_15 = arith.constant 0 : index
    %c0_16 = arith.constant 0 : index
    %42 = vector.load %arg5[%c0_15, %c0_16] : memref<128x384xf32, #tpu.memory_space<vmem>>, vector<128x128xf32>
    tpu.vector_store %arg5[%c0_15, %c0_16], %13 {strides = array<i32>} : memref<128x384xf32, #tpu.memory_space<vmem>>, vector<128x128xf32>,
    %c0_17 = arith.constant 0 : index
    %c128 = arith.constant 128 : index
    %43 = vector.load %arg5[%c0_17, %c128] : memref<128x384xf32, #tpu.memory_space<vmem>>, vector<128x128xf32>
    tpu.vector_store %arg5[%c0_17, %c128], %35 {strides = array<i32>} : memref<128x384xf32, #tpu.memory_space<vmem>>, vector<128x128xf32>,
    %c0_18 = arith.constant 0 : index
    %c256 = arith.constant 256 : index
    %44 = vector.load %arg5[%c0_18, %c256] : memref<128x384xf32, #tpu.memory_space<vmem>>, vector<128x128xf32>
    tpu.vector_store %arg5[%c0_18, %c256], %41 {strides = array<i32>} : memref<128x384xf32, #tpu.memory_space<vmem>>, vector<128x128xf32>,
    return
  }
}

</mosaic_0001>

<bundles_post_ra>
// kernel: actor_critic_forward.1
= control target key start
LH: loop header
LB: loop body
LE: loop exit
PB: predicated region body
PF: predicated region fallthrough
CT: control target
= control target key end

     0   :  { %10 = vsyncpa [#allocation3], 0  ;;  %s1457_s18 = smov [#allocation2]   ;;  %s2191_s0 = inlined_call_operand.vmem [shape: f32[128,32], index: 0, kind: input, shape index: {}]   ;;  %s2192_s1 = inlined_call_operand.vmem [shape: f32[32,80], index: 1, kind: input, shape index: {}]   ;;  %s2193_s2 = inlined_call_operand.vmem [shape: f32[1,80], index: 2, kind: input, shape index: {}]   ;;  %s2194_s3 = inlined_call_operand.hbm [shape: f32[80,384], index: 3, kind: input, shape index: {}]   ;;  %s2195_s4 = inlined_call_operand.vmem [shape: f32[1,384], index: 4, kind: input, shape index: {}]   ;;  %s2196_s5 = inlined_call_operand.vmem [shape: f32[128,384], index: 5, kind: output, shape index: {}]  }
   0x1   :  { %s22_s19 = sshll.u32 %s1457_s18, 4  ;;  %s1433_s22 = scalar_lea.hbm %s2194_s3, 3840  ;;  %s23_s19 = int_to_ptr.vmem [resolvable:$true] %s22_s19 }
   0x2   :  { %p1434_p0 = scmp.ne.s32.totalorder %s2194_s3, %s1433_s22  ;;  %p1437_p1 = scmp.lt.u32.totalorder %s1433_s22, %s2194_s3 }
   0x4   :  { %p1439_p2 = pnand %p1437_p1, %p1434_p0 }
   0x6   :  { %1442 = shalt.err (!%p1439_p2)
}
   0x7   :  { %s1443_s27 = scalar_lea.vmem %s23_s19, 3840  ;;  %p1448_p4 = scmp.lt.s32.totalorder %s23_s19, %s23_s19 }
   0x8   :  { %p1444_p3 = scmp.ne.s32.totalorder %s23_s19, %s1443_s27  ;;  %p1449_p5 = scmp.lt.s32.totalorder %s1443_s27, %s1443_s27 }
   0xa   :  { %p1450_p6 = por %p1449_p5, %p1448_p4 }
   0xc   :  { %p1451_p7 = pnand %p1450_p6, %p1444_p3 }
   0xe   :  { %1454 = shalt.err (!%p1451_p7)
}
   0xf   :  { %s1458_s28 = smov 384   ;;  %s1459_s29 = smov 24  }
  0x10   :  { %28 = dma.hbm_to_vmem [thread:$0]  %s2194_s3, 3840, %s23_s19, [#allocation3], %s1458_s28, %s1458_s28, %s1459_s29  }
  0x11   :  { %1455 = dma.done.wait [#allocation3], 3840  }
  0x12   :  { %1456 = vsyncadd [#allocation3], 4294963456  ;;  %vm61_vm0 = vcmask 261120   ;;  %v50_v0 = vld [vmem:[%s2192_s1] sm:$0xff]  ;;  %v51_v1 = vld [vmem:[%s2192_s1 + $0x8] sm:$0xff]  ;;  %vm318_vm1 = vcmask 654336  }
  0x13   :  { %v52_v2 = vld [vmem:[%s2192_s1 + $0x10] sm:$0xff]  ;;  %v1280_v3 = vpack.c.bf16 %v51_v1, %v50_v0  ;;  %v53_v4 = vld [vmem:[%s2192_s1 + $0x18] sm:$0xff]  ;;  %v34_v5 = vld [vmem:[%s2191_s0] sm:$0xff]  ;;  %vm673_vm2 = vcmask 7168  }
  0x14   :  { %v1284_v6 = vpack.c.bf16 %v53_v4, %v52_v2  ;;  %1212 = vmatprep.mubr.msk.f32.mxu0 %vm61_vm0, %v34_v5  ;;  %v35_v7 = vld [vmem:[%s2191_s0 + $0x8] sm:$0xff]  ;;  %v273_v8 = vld [vmem:[#allocation2 + $0x10] sm:$0xff]  ;;  %v279_v11 = vld [vmem:[#allocation2 + $0x40] sm:$0xff] }
  0x15   :  { %1281 = vmatprep.subr.bf16.mxu0 %v1280_v3  ;;  %v36_v9 = vld [vmem:[%s2191_s0 + $0x10] sm:$0xff]  ;;  %v276_v10 = vld [vmem:[#allocation2 + $0x28] sm:$0xff]  ;;  %v282_v12 = vld [vmem:[#allocation2 + $0x58] sm:$0xff] }
  0x16   :  { %1283 = vmatpush3.bf16.msra.mxu0 %v1280_v3  ;;  %v1308_v13 = vpack.c.bf16 %v276_v10, %v273_v8  ;;  %v272_v14 = vld [vmem:[#allocation2 + $0x8] sm:$0xff]  ;;  %v275_v15 = vld [vmem:[#allocation2 + $0x20] sm:$0xff]  ;;  %v1312_v17 = vpack.c.bf16 %v282_v12, %v279_v11  ;;  %v274_v19 = vld [vmem:[#allocation2 + $0x18] sm:$0xff]  ;;  %v1460_v3 = vmov 0.0  }
  0x17   :  { %1285 = vmatprep.subr.bf16.mxu0 %v1284_v6  ;;  %v271_v16 = vld [vmem:[#allocation2] sm:$0xff]  ;;  %v1288_v18 = vpack.c.bf16 %v275_v15, %v272_v14  ;;  %v285_v20 = vld [vmem:[#allocation2 + $0x70] sm:$0xff]  ;;  %v288_v21 = vld [vmem:[#allocation2 + $0x88] sm:$0xff]  ;;  %431 = vmatprep.mubr.f32.mxu1 %v1460_v3 }
  0x18   :  { %v1290_v22 = vpack.c.bf16 %v274_v19, %v271_v16  ;;  %v278_v23 = vld [vmem:[#allocation2 + $0x38] sm:$0xff]  ;;  %v281_v24 = vld [vmem:[#allocation2 + $0x50] sm:$0xff]  ;;  %v280_v27 = vld [vmem:[#allocation2 + $0x48] sm:$0xff]  ;;  %v1316_v32 = vpack.c.bf16 %v288_v21, %v285_v20 }
  0x19   :  { %v277_v25 = vld [vmem:[#allocation2 + $0x30] sm:$0xff]  ;;  %1289 = vmatprep.subr.bf16.mxu1 %v1288_v18  ;;  %v1292_v26 = vpack.c.bf16 %v281_v24, %v278_v23  ;;  %v284_v28 = vld [vmem:[#allocation2 + $0x68] sm:$0xff]  ;;  %v287_v29 = vld [vmem:[#allocation2 + $0x80] sm:$0xff] }
  0x1a   :  { %1287 = vmatpush3.bf16.msra.mxu0 %v1284_v6  ;;  %v37_v30 = vld [vmem:[%s2191_s0 + $0x18] sm:$0xff]  ;;  %v38_v31 = vld [vmem:[%s2191_s0 + $0x20] sm:$0xff]  ;;  %1291 = vmatpush1.bf16.msra.mxu1 %v1290_v22  ;;  %v1294_v33 = vpack.c.bf16 %v280_v27, %v277_v25  ;;  %v1296_v35 = vpack.c.bf16 %v287_v29, %v284_v28  ;;  %v293_v40 = vld [vmem:[#allocation2 + $0xb0] sm:$0xff] }
  0x1b   :  { %1309 = vmatprep.subr.bf16.mxu0 %v1308_v13  ;;  %v291_v34 = vld [vmem:[#allocation2 + $0xa0] sm:$0xff]  ;;  %1293 = vmatprep.subr.bf16.mxu1 %v1292_v26  ;;  %v294_v36 = vld [vmem:[#allocation2 + $0xb8] sm:$0xff]  ;;  %v39_v41 = vld [vmem:[%s2191_s0 + $0x28] sm:$0xff] }
  0x1c   :  { %v283_v37 = vld [vmem:[#allocation2 + $0x60] sm:$0xff]  ;;  %v286_v38 = vld [vmem:[#allocation2 + $0x78] sm:$0xff]  ;;  %v40_v42 = vld [vmem:[%s2191_s0 + $0x30] sm:$0xff]  ;;  %v1320_v43 = vpack.c.bf16 %v294_v36, %v291_v34 }
  0x1d   :  { %1213 = vmatmul.mubr.msk.f32.vlgmr.msra.gmra.mrb[0].mxu0 %vm61_vm0, %v35_v7  ;;  %v290_v39 = vld [vmem:[#allocation2 + $0x98] sm:$0xff]  ;;  %v1298_v44 = vpack.c.bf16 %v286_v38, %v283_v37  ;;  %v289_v46 = vld [vmem:[#allocation2 + $0x90] sm:$0xff]  ;;  %v292_v47 = vld [vmem:[#allocation2 + $0xa8] sm:$0xff] }
  0x1e   :  { %1215 = vmatprep.mubr.msk.f32.mxu0 %vm61_vm0, %v36_v9  ;;  %1311 = vmatpush3.bf16.msra.mxu0 %v1308_v13  ;;  %v1300_v45 = vpack.c.bf16 %v293_v40, %v290_v39  ;;  %v41_v48 = vld [vmem:[%s2191_s0 + $0x38] sm:$0xff]  ;;  %v42_v49 = vld [vmem:[%s2191_s0 + $0x40] sm:$0xff]  ;;  %v1302_v50 = vpack.c.bf16 %v292_v47, %v289_v46  ;;  %v43_v51 = vld [vmem:[%s2191_s0 + $0x48] sm:$0xff] }
  0x1f   :  { %1313 = vmatprep.subr.bf16.mxu0 %v1312_v17  ;;  %1295 = vmatpush1.bf16.msra.mxu1 %v1294_v33  ;;  %v44_v52 = vld [vmem:[%s2191_s0 + $0x50] sm:$0xff]  ;;  %v45_v53 = vld [vmem:[%s2191_s0 + $0x58] sm:$0xff]  ;;  %v46_v54 = vld [vmem:[%s2191_s0 + $0x60] sm:$0xff] }
  0x20   :  { %1297 = vmatprep.subr.bf16.mxu1 %v1296_v35  ;;  %v47_v55 = vld [vmem:[%s2191_s0 + $0x68] sm:$0xff]  ;;  %v48_v56 = vld [vmem:[%s2191_s0 + $0x70] sm:$0xff]  ;;  %v49_v57 = vld [vmem:[%s2191_s0 + $0x78] sm:$0xff] }
  0x21   :  { %1216 = vmatmul.mubr.msk.f32.gmra.mrb[2].mxu0 %vm61_vm0, %v37_v30  ;;  %v296_v58 = vld [vmem:[#allocation2 + $0xc8] sm:$0xff]  ;;  %v299_v59 = vld [vmem:[#allocation2 + $0xe0] sm:$0xff]  ;;  %v297_v60 = vld [vmem:[#allocation2 + $0xd0] sm:$0xff] }
  0x22   :  { %1218 = vmatprep.mubr.msk.f32.mxu0 %vm61_vm0, %v38_v31  ;;  %1315 = vmatpush3.bf16.msra.mxu0 %v1312_v17  ;;  %v300_v61 = vld [vmem:[#allocation2 + $0xe8] sm:$0xff]  ;;  %v1304_v62 = vpack.c.bf16 %v299_v59, %v296_v58  ;;  %v295_v0 = vld [vmem:[#allocation2 + $0xc0] sm:$0xff]  ;;  %v298_v1 = vld [vmem:[#allocation2 + $0xd8] sm:$0xff] }
  0x23   :  { %1317 = vmatprep.subr.bf16.mxu0 %v1316_v32  ;;  %1299 = vmatpush1.bf16.msra.mxu1 %v1298_v44  ;;  %v1324_v63 = vpack.c.bf16 %v300_v61, %v297_v60  ;;  %v1306_v2 = vpack.c.bf16 %v298_v1, %v295_v0  ;;  %v1584_v4 = vld [vmem:[%s2193_s2] ss:$0 sm:$0xff] }
  0x24   :  { %1301 = vmatprep.subr.bf16.mxu1 %v1300_v45 }
  0x25   :  { %1219 = vmatmul.mubr.msk.f32.gmra.mrb[4].mxu0 %vm61_vm0, %v39_v41 }
  0x26   :  { %1221 = vmatprep.mubr.msk.f32.mxu0 %vm61_vm0, %v40_v42  ;;  %1319 = vmatpush3.bf16.msra.mxu0 %v1316_v32 }
  0x27   :  { %1321 = vmatprep.subr.bf16.mxu0 %v1320_v43  ;;  %1303 = vmatpush1.bf16.msra.mxu1 %v1302_v50 }
  0x28   :  { %1305 = vmatprep.subr.bf16.mxu1 %v1304_v62 }
  0x29   :  { %1222 = vmatmul.mubr.msk.f32.gmra.mrb[6].mxu0 %vm61_vm0, %v41_v48 }
  0x2a   :  { %1224 = vmatprep.mubr.msk.f32.mxu0 %vm61_vm0, %v42_v49  ;;  %1323 = vmatpush3.bf16.msra.mxu0 %v1320_v43 }
  0x2b   :  { %1325 = vmatprep.subr.bf16.mxu0 %v1324_v63  ;;  %1307 = vmatpush1.bf16.msra.mxu1 %v1306_v2 }
  0x2d   :  { %1225 = vmatmul.mubr.msk.f32.gmra.mrb[8].mxu0 %vm61_vm0, %v43_v51 }
  0x2e   :  { %1227 = vmatprep.mubr.msk.f32.mxu0 %vm61_vm0, %v44_v52  ;;  %1327 = vmatpush3.bf16.msra.mxu0 %v1324_v63 }
  0x31   :  { %1228 = vmatmul.mubr.msk.f32.gmra.mrb[10].mxu0 %vm61_vm0, %v45_v53  ;;  %v1461_v53 = vmov 0  }
  0x32   :  { %1230 = vmatprep.mubr.msk.f32.mxu0 %vm61_vm0, %v46_v54  ;;  %1334 = vset.pattern.permute.xlu1 %v1461_v53  ;;  %v2197_v54 = vlaneseq }
  0x33   :  { %1333 = vset.pattern.permute.xlu0 %v1461_v53 }
  0x35   :  { %1231 = vmatmul.mubr.msk.f32.gmra.mrb[12].mxu0 %vm61_vm0, %v47_v55  ;;  %v304_v55 = vshrl.u32 %v2197_v54, 7 }
  0x36   :  { %1233 = vmatprep.mubr.msk.f32.mxu0 %vm61_vm0, %v48_v56 }
  0x37   :  { %v305_v56 = vsub.s32 0, %v304_v55  ;;  %v309_v58 = vsub.s32 1, %v304_v55 }
  0x39   :  { %1234 = vmatmul.mubr.msk.f32.gmra.mrb[14].mxu0 %vm61_vm0, %v49_v57  ;;  %v301_v57 = vld [vmem:[%s2195_s4] sm:$0x7] }
  0x3a   :  { %v1653_v59 = vrot.slane %v301_v57, %v305_v56  ;;  %v1655_v60 = vrot.slane %v301_v57, %v309_v58 }
  0xf0   :  { %v1214_v5 = vpop.f32.mrb[0].mxu0 }
  0xf1   :  { %v182_v6 = vadd.f32 %v1214_v5, %v1584_v4  ;;  %v176_v7 = vpop.f32.mrb[1].mxu0 }
  0xf2   :  { %v177_v8 = vadd.f32 %v1584_v4, %v176_v7 }
  0xf3   :  { %v256_v11 = vmax.f32 %v182_v6, 0.0 }
  0xf4   :  { %v255_v9 = vmax.f32 %v177_v8, 0.0  ;;  %v1217_v10 = vpop.f32.mrb[2].mxu0 }
  0xf5   :  { %v192_v12 = vadd.f32 %v1217_v10, %v1584_v4  ;;  %v186_v13 = vpop.f32.mrb[3].mxu0 }
  0xf6   :  { %v187_v14 = vadd.f32 %v1584_v4, %v186_v13  ;;  %1126 = vmatmul.mubr.msk.f32.vlgmr.msra.gmra.mrb[0].mxu1 %vm318_vm1, %v255_v9  ;;  %1256 = vmatprep.mubr.msk.f32.mxu0 %vm318_vm1, %v255_v9 }
  0xf7   :  { %1257 = vmatmul.mubr.msk.f32.vlgmr.msra.gmra.mrb[16].mxu0 %vm318_vm1, %v256_v11  ;;  %437 = vmatprep.mubr.f32.mxu1 %v1460_v3  ;;  %v258_v17 = vmax.f32 %v192_v12, 0.0 }
  0xf8   :  { %v257_v15 = vmax.f32 %v187_v14, 0.0  ;;  %v1220_v16 = vpop.f32.mrb[4].mxu0 }
  0xf9   :  { %v202_v18 = vadd.f32 %v1220_v16, %v1584_v4  ;;  %v196_v19 = vpop.f32.mrb[5].mxu0 }
  0xfa   :  { %v197_v20 = vadd.f32 %v1584_v4, %v196_v19  ;;  %1127 = vmatmul.mubr.msk.f32.gmra.mrb[2].mxu1 %vm318_vm1, %v256_v11  ;;  %1259 = vmatprep.mubr.msk.f32.mxu0 %vm318_vm1, %v257_v15 }
  0xfb   :  { %1260 = vmatmul.mubr.msk.f32.gmra.mrb[18].mxu0 %vm318_vm1, %v258_v17  ;;  %443 = vmatprep.mubr.f32.mxu1 %v1460_v3  ;;  %v260_v23 = vmax.f32 %v202_v18, 0.0 }
  0xfc   :  { %v259_v21 = vmax.f32 %v197_v20, 0.0  ;;  %v1223_v22 = vpop.f32.mrb[6].mxu0 }
  0xfd   :  { %v212_v24 = vadd.f32 %v1223_v22, %v1584_v4  ;;  %v206_v25 = vpop.f32.mrb[7].mxu0 }
  0xfe   :  { %v207_v26 = vadd.f32 %v1584_v4, %v206_v25  ;;  %1128 = vmatmul.mubr.msk.f32.gmra.mrb[4].mxu1 %vm318_vm1, %v257_v15  ;;  %1262 = vmatprep.mubr.msk.f32.mxu0 %vm318_vm1, %v259_v21  ;;  %v313_v15 = vsub.s32 2, %v304_v55 }
  0xff   :  { %1263 = vmatmul.mubr.msk.f32.gmra.mrb[20].mxu0 %vm318_vm1, %v260_v23  ;;  %449 = vmatprep.mubr.f32.mxu1 %v1460_v3  ;;  %v262_v29 = vmax.f32 %v212_v24, 0.0 }
 0x100   :  { %v261_v27 = vmax.f32 %v207_v26, 0.0  ;;  %v1226_v28 = vpop.f32.mrb[8].mxu0  ;;  %v1685_v22 = vrot.slane %v301_v57, %v313_v15 }
 0x101   :  { %v222_v30 = vadd.f32 %v1226_v28, %v1584_v4  ;;  %v216_v31 = vpop.f32.mrb[9].mxu0 }
 0x102   :  { %v217_v32 = vadd.f32 %v1584_v4, %v216_v31  ;;  %1129 = vmatmul.mubr.msk.f32.gmra.mrb[6].mxu1 %vm318_vm1, %v258_v17  ;;  %1265 = vmatprep.mubr.msk.f32.mxu0 %vm318_vm1, %v261_v27 }
 0x103   :  { %1266 = vmatmul.mubr.msk.f32.gmra.mrb[22].mxu0 %vm318_vm1, %v262_v29  ;;  %455 = vmatprep.mubr.f32.mxu1 %v1460_v3  ;;  %v264_v35 = vmax.f32 %v222_v30, 0.0 }
 0x104   :  { %v263_v33 = vmax.f32 %v217_v32, 0.0  ;;  %v1229_v34 = vpop.f32.mrb[10].mxu0 }
 0x105   :  { %v232_v36 = vadd.f32 %v1229_v34, %v1584_v4  ;;  %v226_v37 = vpop.f32.mrb[11].mxu0 }
 0x106   :  { %v227_v38 = vadd.f32 %v1584_v4, %v226_v37  ;;  %1130 = vmatmul.mubr.msk.f32.gmra.mrb[8].mxu1 %vm318_vm1, %v259_v21  ;;  %1268 = vmatprep.mubr.msk.f32.mxu0 %vm318_vm1, %v263_v33 }
 0x107   :  { %1269 = vmatmul.mubr.msk.f32.gmra.mrb[24].mxu0 %vm318_vm1, %v264_v35  ;;  %461 = vmatprep.mubr.f32.mxu1 %v1460_v3  ;;  %v266_v41 = vmax.f32 %v232_v36, 0.0 }
 0x108   :  { %v265_v39 = vmax.f32 %v227_v38, 0.0  ;;  %v1232_v40 = vpop.f32.mrb[12].mxu0 }
 0x109   :  { %v242_v42 = vadd.f32 %v1232_v40, %v1584_v4  ;;  %v236_v43 = vpop.f32.mrb[13].mxu0 }
 0x10a   :  { %v237_v44 = vadd.f32 %v1584_v4, %v236_v43  ;;  %1131 = vmatmul.mubr.msk.f32.gmra.mrb[10].mxu1 %vm318_vm1, %v260_v23  ;;  %1271 = vmatprep.mubr.msk.f32.mxu0 %vm318_vm1, %v265_v39 }
 0x10b   :  { %1272 = vmatmul.mubr.msk.f32.gmra.mrb[26].mxu0 %vm318_vm1, %v266_v41  ;;  %467 = vmatprep.mubr.f32.mxu1 %v1460_v3  ;;  %v268_v47 = vmax.f32 %v242_v42, 0.0 }
 0x10c   :  { %v267_v45 = vmax.f32 %v237_v44, 0.0  ;;  %v1235_v46 = vpop.f32.mrb[14].mxu0 }
 0x10d   :  { %v252_v48 = vadd.f32 %v1235_v46, %v1584_v4  ;;  %v246_v49 = vpop.f32.mrb[15].mxu0 }
 0x10e   :  { %v247_v50 = vadd.f32 %v1584_v4, %v246_v49  ;;  %1132 = vmatmul.mubr.msk.f32.gmra.mrb[12].mxu1 %vm318_vm1, %v261_v27  ;;  %1274 = vmatprep.mubr.msk.f32.mxu0 %vm318_vm1, %v267_v45 }
 0x10f   :  { %1275 = vmatmul.mubr.msk.f32.gmra.mrb[28].mxu0 %vm318_vm1, %v268_v47  ;;  %473 = vmatprep.mubr.f32.mxu1 %v1460_v3  ;;  %v270_v52 = vmax.f32 %v252_v48, 0.0 }
 0x110   :  { %v269_v51 = vmax.f32 %v247_v50, 0.0 }
 0x112   :  { %1133 = vmatmul.mubr.msk.f32.gmra.mrb[14].mxu1 %vm318_vm1, %v262_v29  ;;  %1277 = vmatprep.mubr.msk.f32.mxu0 %vm318_vm1, %v269_v51 }
 0x113   :  { %1278 = vmatmul.mubr.msk.f32.gmra.mrb[30].mxu0 %vm318_vm1, %v270_v52  ;;  %479 = vmatprep.mubr.f32.mxu1 %v1460_v3 }
 0x116   :  { %1134 = vmatmul.mubr.msk.f32.gmra.mrb[16].mxu1 %vm318_vm1, %v263_v33 }
 0x117   :  { %485 = vmatprep.mubr.f32.mxu1 %v1460_v3 }
 0x11a   :  { %1135 = vmatmul.mubr.msk.f32.gmra.mrb[18].mxu1 %vm318_vm1, %v264_v35 }
 0x11b   :  { %491 = vmatprep.mubr.f32.mxu1 %v1460_v3 }
 0x11e   :  { %1136 = vmatmul.mubr.msk.f32.gmra.mrb[20].mxu1 %vm318_vm1, %v265_v39 }
 0x11f   :  { %497 = vmatprep.mubr.f32.mxu1 %v1460_v3 }
 0x122   :  { %1137 = vmatmul.mubr.msk.f32.gmra.mrb[22].mxu1 %vm318_vm1, %v266_v41 }
 0x123   :  { %503 = vmatprep.mubr.f32.mxu1 %v1460_v3 }
 0x126   :  { %1138 = vmatmul.mubr.msk.f32.gmra.mrb[24].mxu1 %vm318_vm1, %v267_v45 }
 0x127   :  { %509 = vmatprep.mubr.f32.mxu1 %v1460_v3 }
 0x12a   :  { %1139 = vmatmul.mubr.msk.f32.gmra.mrb[26].mxu1 %vm318_vm1, %v268_v47 }
 0x12b   :  { %515 = vmatprep.mubr.f32.mxu1 %v1460_v3 }
 0x12e   :  { %1140 = vmatmul.mubr.msk.f32.gmra.mrb[28].mxu1 %vm318_vm1, %v269_v51 }
 0x12f   :  { %521 = vmatprep.mubr.f32.mxu1 %v1460_v3 }
 0x132   :  { %1141 = vmatmul.mubr.msk.f32.gmra.mrb[30].mxu1 %vm318_vm1, %v270_v52 }
 0x1c9   :  { %v433_v61 = vpop.f32.mrb[0].mxu1 }
 0x1ca   :  { %v434_v62 = vadd.f32 %v433_v61, %v1653_v59  ;;  %v435_v63 = vpop.f32.mrb[1].mxu1  ;;  %v1258_v0 = vpop.f32.mrb[16].mxu0 }
 0x1cb   :  { %v1659_v1 = vadd.f32 %v435_v63, %v1655_v60  ;;  %v594_v2 = vpop.f32.mrb[17].mxu0  ;;  %v1696_v29 = vadd.f32 %v1258_v0, %v1685_v22 }
 0x1cc   :  { %1056 = vst [vmem:[%s2196_s5] sm:$0xff] %v434_v62  ;;  %v1702_v30 = vadd.f32 %v594_v2, %v1685_v22 }
 0x1cd   :  { %v439_v3 = vpop.f32.mrb[2].mxu1  ;;  %813 = vmax.xlane.f32.xlu0 %v1659_v1  ;;  %v675_v43 = vsel %vm673_vm2, %v1696_v29, -inf }
 0x1ce   :  { %v440_v4 = vadd.f32 %v439_v3, %v1653_v59  ;;  %v441_v5 = vpop.f32.mrb[3].mxu1  ;;  %v1261_v6 = vpop.f32.mrb[18].mxu0  ;;  %v674_v46 = vsel %vm673_vm2, %v1702_v30, -inf }
 0x1cf   :  { %v1667_v7 = vadd.f32 %v441_v5, %v1655_v60  ;;  %v604_v8 = vpop.f32.mrb[19].mxu0  ;;  %v1719_v39 = vadd.f32 %v1261_v6, %v1685_v22 }
 0x1d0   :  { %1057 = vst [vmem:[%s2196_s5 + $0x18] sm:$0xff] %v440_v4  ;;  %v1722_v40 = vadd.f32 %v604_v8, %v1685_v22 }
 0x1d1   :  { %v445_v9 = vpop.f32.mrb[4].mxu1  ;;  %815 = vmax.xlane.f32.xlu0 %v1667_v7  ;;  %v677_v58 = vsel %vm673_vm2, %v1719_v39, -inf }
 0x1d2   :  { %v446_v10 = vadd.f32 %v445_v9, %v1653_v59  ;;  %v447_v11 = vpop.f32.mrb[5].mxu1  ;;  %v1264_v12 = vpop.f32.mrb[20].mxu0  ;;  %v676_v61 = vsel %vm673_vm2, %v1722_v40, -inf }
 0x1d3   :  { %v1675_v13 = vadd.f32 %v447_v11, %v1655_v60  ;;  %v614_v14 = vpop.f32.mrb[21].mxu0  ;;  %v1705_v31 = vadd.f32 %v1264_v12, %v1685_v22 }
 0x1d4   :  { %1058 = vst [vmem:[%s2196_s5 + $0x30] sm:$0xff] %v446_v10  ;;  %v1708_v32 = vadd.f32 %v614_v14, %v1685_v22 }
 0x1d5   :  { %v451_v16 = vpop.f32.mrb[6].mxu1  ;;  %817 = vmax.xlane.f32.xlu1 %v1675_v13  ;;  %v680_v47 = vsel %vm673_vm2, %v1705_v31, -inf }
 0x1d6   :  { %v452_v17 = vadd.f32 %v451_v16, %v1653_v59  ;;  %v453_v18 = vpop.f32.mrb[7].mxu1  ;;  %v1267_v19 = vpop.f32.mrb[22].mxu0  ;;  %v678_v48 = vsel %vm673_vm2, %v1708_v32, -inf  ;;  %v681_v2 = vmax.f32 %v675_v43, %v680_v47 }
 0x1d7   :  { %v1683_v20 = vadd.f32 %v453_v18, %v1655_v60  ;;  %v624_v21 = vpop.f32.mrb[23].mxu0  ;;  %v1712_v34 = vadd.f32 %v1267_v19, %v1685_v22  ;;  %v679_v6 = vmax.f32 %v674_v46, %v678_v48 }
 0x1d8   :  { %1059 = vst [vmem:[%s2196_s5 + $0x48] sm:$0xff] %v452_v17  ;;  %v1715_v35 = vadd.f32 %v624_v21, %v1685_v22 }
 0x1d9   :  { %v457_v23 = vpop.f32.mrb[8].mxu1  ;;  %819 = vmax.xlane.f32.xlu1 %v1683_v20  ;;  %v684_v51 = vsel %vm673_vm2, %v1712_v34, -inf }
 0x1da   :  { %v458_v24 = vadd.f32 %v457_v23, %v1653_v59  ;;  %v459_v25 = vpop.f32.mrb[9].mxu1  ;;  %v1270_v26 = vpop.f32.mrb[24].mxu0  ;;  %v682_v52 = vsel %vm673_vm2, %v1715_v35, -inf  ;;  %v685_v8 = vmax.f32 %v677_v58, %v684_v51 }
 0x1db   :  { %v1693_v27 = vadd.f32 %v459_v25, %v1655_v60  ;;  %v634_v28 = vpop.f32.mrb[25].mxu0  ;;  %v1730_v44 = vadd.f32 %v1270_v26, %v1685_v22  ;;  %v683_v9 = vmax.f32 %v676_v61, %v682_v52 }
 0x1dc   :  { %1060 = vst [vmem:[%s2196_s5 + $0x60] sm:$0xff] %v458_v24  ;;  %v1733_v45 = vadd.f32 %v634_v28, %v1685_v22 }
 0x1dd   :  { %v463_v33 = vpop.f32.mrb[10].mxu1  ;;  %821 = vmax.xlane.f32.xlu0 %v1693_v27  ;;  %v688_v3 = vsel %vm673_vm2, %v1730_v44, -inf }
 0x1de   :  { %v464_v36 = vadd.f32 %v463_v33, %v1653_v59  ;;  %v465_v37 = vpop.f32.mrb[11].mxu1  ;;  %v1273_v38 = vpop.f32.mrb[26].mxu0  ;;  %v686_v4 = vsel %vm673_vm2, %v1733_v45, -inf  ;;  %v689_v19 = vmax.f32 %v681_v2, %v688_v3 }
 0x1df   :  { %v1725_v41 = vadd.f32 %v465_v37, %v1655_v60  ;;  %v644_v42 = vpop.f32.mrb[27].mxu0  ;;  %v1745_v49 = vadd.f32 %v1273_v38, %v1685_v22  ;;  %v687_v21 = vmax.f32 %v679_v6, %v686_v4 }
 0x1e0   :  { %1061 = vst [vmem:[%s2196_s5 + $0x78] sm:$0xff] %v464_v36  ;;  %v1753_v53 = vadd.f32 %v644_v42, %v1685_v22 }
 0x1e1   :  { %v469_v50 = vpop.f32.mrb[12].mxu1  ;;  %823 = vmax.xlane.f32.xlu1 %v1725_v41  ;;  %v692_v10 = vsel %vm673_vm2, %v1745_v49, -inf }
 0x1e2   :  { %v470_v55 = vadd.f32 %v469_v50, %v1653_v59  ;;  %v471_v56 = vpop.f32.mrb[13].mxu1  ;;  %v1276_v57 = vpop.f32.mrb[28].mxu0  ;;  %v690_v12 = vsel %vm673_vm2, %v1753_v53, -inf  ;;  %v693_v26 = vmax.f32 %v685_v8, %v692_v10 }
 0x1e3   :  { %v1761_v62 = vadd.f32 %v471_v56, %v1655_v60  ;;  %v1764_v63 = vadd.f32 %v1276_v57, %v1685_v22  ;;  %v654_v0 = vpop.f32.mrb[29].mxu0  ;;  %v691_v33 = vmax.f32 %v683_v9, %v690_v12 }
 0x1e4   :  { %1062 = vst [vmem:[%s2196_s5 + $0x90] sm:$0xff] %v470_v55  ;;  %v1774_v5 = vadd.f32 %v654_v0, %v1685_v22 }
 0x1e5   :  { %v475_v11 = vpop.f32.mrb[14].mxu1  ;;  %825 = vmax.xlane.f32.xlu0 %v1761_v62  ;;  %v696_v14 = vsel %vm673_vm2, %v1764_v63, -inf }
 0x1e6   :  { %v694_v15 = vsel %vm673_vm2, %v1774_v5, -inf  ;;  %v476_v16 = vadd.f32 %v475_v11, %v1653_v59  ;;  %v477_v17 = vpop.f32.mrb[15].mxu1  ;;  %v1279_v18 = vpop.f32.mrb[30].mxu0  ;;  %v697_v36 = vmax.f32 %v689_v19, %v696_v14 }
 0x1e7   :  { %v1787_v23 = vadd.f32 %v477_v17, %v1655_v60  ;;  %v1790_v24 = vadd.f32 %v1279_v18, %v1685_v22  ;;  %v664_v25 = vpop.f32.mrb[31].mxu0  ;;  %v695_v37 = vmax.f32 %v687_v21, %v694_v15 }
 0x1e8   :  { %1063 = vst [vmem:[%s2196_s5 + $0xa8] sm:$0xff] %v476_v16  ;;  %v1796_v28 = vadd.f32 %v664_v25, %v1685_v22 }
 0x1e9   :  { %v700_v38 = vsel %vm673_vm2, %v1790_v24, -inf  ;;  %v481_v42 = vpop.f32.mrb[16].mxu1  ;;  %827 = vmax.xlane.f32.xlu1 %v1787_v23  ;;  %v702_v51 = vmax.f32 %v695_v37, %v697_v36 }
 0x1ea   :  { %v701_v43 = vmax.f32 %v693_v26, %v700_v38  ;;  %v698_v46 = vsel %vm673_vm2, %v1796_v28, -inf  ;;  %v482_v47 = vadd.f32 %v481_v42, %v1653_v59  ;;  %v483_v48 = vpop.f32.mrb[17].mxu1 }
 0x1eb   :  { %v699_v50 = vmax.f32 %v691_v33, %v698_v46  ;;  %v1805_v22 = vadd.f32 %v483_v48, %v1655_v60 }
 0x1ec   :  { %1064 = vst [vmem:[%s2196_s5 + $0xc0] sm:$0xff] %v482_v47 }
 0x1ed   :  { %v703_v52 = vmax.f32 %v699_v50, %v701_v43  ;;  %v487_v55 = vpop.f32.mrb[18].mxu1  ;;  %829 = vmax.xlane.f32.xlu0 %v1805_v22 }
 0x1ee   :  { %v488_v56 = vadd.f32 %v487_v55, %v1653_v59  ;;  %v489_v57 = vpop.f32.mrb[19].mxu1 }
 0x1ef   :  { %v704_v58 = vmax.f32 %v702_v51, %v703_v52  ;;  %v1813_v61 = vadd.f32 %v489_v57, %v1655_v60 }
 0x1f0   :  { %1065 = vst [vmem:[%s2196_s5 + $0xd8] sm:$0xff] %v488_v56 }
 0x1f1   :  { %v705_v0 = vrot.slane %v704_v58, 4  ;;  %v493_v2 = vpop.f32.mrb[20].mxu1  ;;  %831 = vmax.xlane.f32.xlu1 %v1813_v61 }
 0x1f2   :  { %v494_v3 = vadd.f32 %v493_v2, %v1653_v59  ;;  %v495_v4 = vpop.f32.mrb[21].mxu1 }
 0x1f3   :  { %v706_v6 = vmax.f32 %v704_v58, %v705_v0  ;;  %v1821_v8 = vadd.f32 %v495_v4, %v1655_v60 }
 0x1f4   :  { %1066 = vst [vmem:[%s2196_s5 + $0xf0] sm:$0xff] %v494_v3 }
 0x1f5   :  { %v707_v9 = vrot.slane %v706_v6, 2  ;;  %v499_v10 = vpop.f32.mrb[22].mxu1  ;;  %833 = vmax.xlane.f32.xlu0 %v1821_v8 }
 0x1f6   :  { %v500_v11 = vadd.f32 %v499_v10, %v1653_v59  ;;  %v501_v12 = vpop.f32.mrb[23].mxu1 }
 0x1f7   :  { %v708_v14 = vmax.f32 %v706_v6, %v707_v9  ;;  %v1829_v15 = vadd.f32 %v501_v12, %v1655_v60 }
 0x1f8   :  { %1067 = vst [vmem:[%s2196_s5 + $0x108] sm:$0xff] %v500_v11 }
 0x1f9   :  { %v709_v16 = vrot.slane %v708_v14, 1  ;;  %v505_v17 = vpop.f32.mrb[24].mxu1  ;;  %835 = vmax.xlane.f32.xlu1 %v1829_v15 }
 0x1fa   :  { %v506_v18 = vadd.f32 %v505_v17, %v1653_v59  ;;  %v507_v19 = vpop.f32.mrb[25].mxu1 }
 0x1fb   :  { %v1836_v21 = vmax.f32 %v708_v14, %v709_v16  ;;  %v1839_v25 = vadd.f32 %v507_v19, %v1655_v60 }
 0x1fc   :  { %1068 = vst [vmem:[%s2196_s5 + $0x120] sm:$0xff] %v506_v18 }
 0x1fd   :  { %v511_v26 = vpop.f32.mrb[26].mxu1  ;;  %837 = vmax.xlane.f32.xlu0 %v1839_v25  ;;  %v711_v37 = vsub.f32 %v1702_v30, %v1836_v21  ;;  %v712_v38 = vsub.f32 %v1696_v29, %v1836_v21  ;;  %v713_v43 = vsub.f32 %v1722_v40, %v1836_v21  ;;  %v714_v46 = vsub.f32 %v1719_v39, %v1836_v21 }
 0x1fe   :  { %v512_v33 = vadd.f32 %v511_v26, %v1653_v59  ;;  %v513_v36 = vpop.f32.mrb[27].mxu1  ;;  %v715_v48 = vsub.f32 %v1708_v32, %v1836_v21  ;;  %v716_v57 = vsub.f32 %v1705_v31, %v1836_v21  ;;  %v717_v3 = vsub.f32 %v1715_v35, %v1836_v21 }
 0x1ff   :  { %v1851_v42 = vadd.f32 %v513_v36, %v1655_v60  ;;  %v727_v52 = vmul.f32 1.442695, %v711_v37  ;;  %v729_v55 = vmul.f32 1.442695, %v712_v38  ;;  %v731_v58 = vmul.f32 1.442695, %v713_v43 }
 0x200   :  { %1069 = vst [vmem:[%s2196_s5 + $0x138] sm:$0xff] %v512_v33  ;;  %v733_v0 = vmul.f32 1.442695, %v714_v46  ;;  %v735_v4 = vmul.f32 1.442695, %v715_v48  ;;  %v718_v11 = vsub.f32 %v1712_v34, %v1836_v21  ;;  %v719_v14 = vsub.f32 %v1733_v45, %v1836_v21 }
 0x201   :  { %v517_v47 = vpop.f32.mrb[28].mxu1  ;;  %839 = vmax.xlane.f32.xlu1 %v1851_v42  ;;  %1335 = vpow2.f32 %v727_v52  ;;  %v737_v12 = vmul.f32 1.442695, %v716_v57  ;;  %v721_v17 = vsub.f32 %v1753_v53, %v1836_v21  ;;  %v722_v33 = vsub.f32 %v1745_v49, %v1836_v21 }
 0x202   :  { %v518_v50 = vadd.f32 %v517_v47, %v1653_v59  ;;  %v519_v51 = vpop.f32.mrb[29].mxu1  ;;  %1337 = vpow2.f32 %v729_v55  ;;  %v741_v16 = vmul.f32 1.442695, %v718_v11  ;;  %v743_v18 = vmul.f32 1.442695, %v719_v14 }
 0x203   :  { %v1865_v56 = vadd.f32 %v519_v51, %v1655_v60  ;;  %1339 = vpow2.f32 %v731_v58  ;;  %v723_v47 = vsub.f32 %v1774_v5, %v1836_v21  ;;  %v747_v48 = vmul.f32 1.442695, %v721_v17 }
 0x204   :  { %1070 = vst [vmem:[%s2196_s5 + $0x150] sm:$0xff] %v518_v50  ;;  %1341 = vpow2.f32 %v733_v0  ;;  %v724_v55 = vsub.f32 %v1764_v63, %v1836_v21  ;;  %v749_v57 = vmul.f32 1.442695, %v722_v33 }
 0x205   :  { %v523_v2 = vpop.f32.mrb[30].mxu1  ;;  %841 = vmax.xlane.f32.xlu0 %v1865_v56  ;;  %1343 = vpow2.f32 %v735_v4  ;;  %v751_v4 = vmul.f32 1.442695, %v723_v47 }
 0x206   :  { %v524_v6 = vadd.f32 %v523_v2, %v1653_v59  ;;  %v525_v9 = vpop.f32.mrb[31].mxu1  ;;  %v739_v59 = vmul.f32 1.442695, %v717_v3  ;;  %1345 = vpow2.f32 %v737_v12  ;;  %v725_v3 = vsub.f32 %v1796_v28, %v1836_v21 }
 0x207   :  { %v1877_v10 = vadd.f32 %v525_v9, %v1655_v60  ;;  %v720_v60 = vsub.f32 %v1730_v44, %v1836_v21  ;;  %v726_v12 = vsub.f32 %v1790_v24, %v1836_v21  ;;  %v753_v14 = vmul.f32 1.442695, %v724_v55 }
 0x208   :  { %1071 = vst [vmem:[%s2196_s5 + $0x168] sm:$0xff] %v524_v6  ;;  %1347 = vpow2.f32 %v739_v59  ;;  %v755_v17 = vmul.f32 1.442695, %v725_v3 }
 0x209   :  { %843 = vmax.xlane.f32.xlu1 %v1877_v10  ;;  %1349 = vpow2.f32 %v741_v16  ;;  %v745_v36 = vmul.f32 1.442695, %v720_v60 }
 0x20a   :  { %1351 = vpow2.f32 %v743_v18 }
 0x20b   :  { %v1891_v19 = vpop.eup %1335  ;;  %1353 = vpow2.f32 %v745_v36 }
 0x20c   :  { %v1893_v26 = vpop.eup %1337  ;;  %v759_v37 = vsel %vm673_vm2, %v1891_v19, 0.0  ;;  %1355 = vpow2.f32 %v747_v48 }
 0x20d   :  { %v1899_v38 = vpop.eup %1339  ;;  %v760_v43 = vsel %vm673_vm2, %v1893_v26, 0.0  ;;  %1357 = vpow2.f32 %v749_v57 }
 0x20e   :  { %v1903_v46 = vpop.eup %1341  ;;  %v761_v50 = vadd.f32 %v760_v43, %v759_v37  ;;  %v762_v51 = vsel %vm673_vm2, %v1899_v38, 0.0  ;;  %1359 = vpow2.f32 %v751_v4  ;;  %v757_v37 = vmul.f32 1.442695, %v726_v12 }
 0x20f   :  { %v1909_v52 = vpop.eup %1343  ;;  %v764_v0 = vsel %vm673_vm2, %v1903_v46, 0.0  ;;  %1361 = vpow2.f32 %v753_v14 }
 0x210   :  { %v763_v58 = vadd.f32 %v762_v51, %v761_v50  ;;  %v1915_v2 = vpop.eup %1345  ;;  %v766_v9 = vsel %vm673_vm2, %v1909_v52, 0.0  ;;  %1363 = vpow2.f32 %v755_v17 }
 0x211   :  { %v768_v60 = vsel %vm673_vm2, %v1915_v2, 0.0  ;;  %1365 = vpow2.f32 %v757_v37 }
 0x212   :  { %v765_v6 = vadd.f32 %v764_v0, %v763_v58  ;;  %v1921_v11 = vpop.eup %1347 }
 0x213   :  { %v1927_v16 = vpop.eup %1349  ;;  %v770_v33 = vsel %vm673_vm2, %v1921_v11, 0.0 }
 0x214   :  { %v767_v59 = vadd.f32 %v766_v9, %v765_v6  ;;  %v1931_v36 = vpop.eup %1351  ;;  %v772_v21 = vsel %vm673_vm2, %v1927_v16, 0.0 }
 0x215   :  { %v1354_v47 = vpop.eup %1353  ;;  %v774_v50 = vsel %vm673_vm2, %v1931_v36, 0.0 }
 0x216   :  { %v769_v18 = vadd.f32 %v768_v60, %v767_v59  ;;  %v1937_v51 = vpop.eup %1355  ;;  %v776_v57 = vsel %vm673_vm2, %v1354_v47, 0.0 }
 0x217   :  { %v1358_v58 = vpop.eup %1357  ;;  %v778_v3 = vsel %vm673_vm2, %v1937_v51, 0.0 }
 0x218   :  { %v771_v43 = vadd.f32 %v770_v33, %v769_v18  ;;  %v1360_v4 = vpop.eup %1359  ;;  %v780_v9 = vsel %vm673_vm2, %v1358_v58, 0.0 }
 0x219   :  { %v1362_v12 = vpop.eup %1361  ;;  %v782_v59 = vsel %vm673_vm2, %v1360_v4, 0.0 }
 0x21a   :  { %v773_v48 = vadd.f32 %v772_v21, %v771_v43  ;;  %v1364_v60 = vpop.eup %1363  ;;  %v784_v18 = vsel %vm673_vm2, %v1362_v12, 0.0 }
 0x21b   :  { %v1366_v33 = vpop.eup %1365  ;;  %v786_v43 = vsel %vm673_vm2, %v1364_v60, 0.0 }
 0x21c   :  { %v775_v55 = vadd.f32 %v774_v50, %v773_v48  ;;  %v788_v48 = vsel %vm673_vm2, %v1366_v33, 0.0 }
 0x21e   :  { %v777_v0 = vadd.f32 %v776_v57, %v775_v55 }
 0x220   :  { %v779_v6 = vadd.f32 %v778_v3, %v777_v0 }
 0x222   :  { %v781_v14 = vadd.f32 %v780_v9, %v779_v6 }
 0x224   :  { %v783_v17 = vadd.f32 %v782_v59, %v781_v14 }
 0x226   :  { %v785_v37 = vadd.f32 %v784_v18, %v783_v17 }
 0x228   :  { %v787_v21 = vadd.f32 %v786_v43, %v785_v37 }
 0x22a   :  { %v789_v50 = vadd.f32 %v788_v48, %v787_v21 }
 0x22c   :  { %v790_v55 = vrot.slane %v789_v50, 4 }
 0x22e   :  { %v791_v57 = vadd.f32 %v790_v55, %v789_v50 }
 0x230   :  { %v792_v0 = vrot.slane %v791_v57, 2 }
 0x232   :  { %v793_v3 = vadd.f32 %v792_v0, %v791_v57 }
 0x234   :  { %v794_v54 = vrot.slane %v793_v3, 1 }
 0x236   :  { %v795_v6 = vadd.f32 %v794_v54, %v793_v3 }
 0x238   :  { %1367 = vrcp.f32 %v795_v6 }
 0x242   :  { %v1368_v9 = vpop.eup %1367 }
 0x243   :  { %v798_v14 = vmul.f32 %v1368_v9, %v1893_v26  ;;  %v797_v59 = vmul.f32 %v1368_v9, %v1891_v19  ;;  %v1949_v17 = vmul.f32 %v1368_v9, %v1366_v33  ;;  %v799_v18 = vmul.f32 %v1368_v9, %v1899_v38 }
 0x244   :  { %v806_v37 = vmul.f32 %v1368_v9, %v1354_v47  ;;  %v1952_v43 = vmul.f32 %v1368_v9, %v1364_v60  ;;  %v800_v21 = vmul.f32 %v1368_v9, %v1903_v46  ;;  %v808_v54 = vmul.f32 %v1368_v9, %v1358_v58 }
 0x245   :  { %967 = vperm.xlu1 %1334, %v798_v14   ;;  %962 = vperm.xlu0 %1333, %v797_v59   ;;  %v801_v26 = vmul.f32 %v1368_v9, %v1909_v52  ;;  %v810_v48 = vmul.f32 %v1368_v9, %v1362_v12  ;;  %v802_v19 = vmul.f32 %v1368_v9, %v1915_v2 }
 0x246   :  { %v803_v38 = vmul.f32 %v1368_v9, %v1921_v11  ;;  %v804_v60 = vmul.f32 %v1368_v9, %v1927_v16  ;;  %v805_v46 = vmul.f32 %v1368_v9, %v1931_v36  ;;  %v807_v2 = vmul.f32 %v1368_v9, %v1937_v51 }
 0x247   :  { %v809_v11 = vmul.f32 %v1368_v9, %v1360_v4 }
 0x249   :  { %972 = vperm.xlu1 %1334, %v799_v18   ;;  %1007 = vperm.xlu0 %1333, %v806_v37  }
 0x24d   :  { %977 = vperm.xlu1 %1334, %v800_v21   ;;  %1017 = vperm.xlu0 %1333, %v808_v54  }
 0x251   :  { %982 = vperm.xlu1 %1334, %v801_v26   ;;  %1027 = vperm.xlu0 %1333, %v810_v48  }
 0x255   :  { %987 = vperm.xlu1 %1334, %v802_v19  }
 0x259   :  { %992 = vperm.xlu1 %1334, %v803_v38  }
 0x25a   :  { %v814_v47 = vpop.xlane.xlu0 %813 }
 0x25b   :  { %v845_v33 = vsub.f32 %v1659_v1, %v814_v47 }
 0x25d   :  { %997 = vperm.xlu1 %1334, %v804_v60   ;;  %v861_v12 = vmul.f32 1.442695, %v845_v33 }
 0x25e   :  { %v816_v50 = vpop.xlane.xlu0 %815 }
 0x25f   :  { %1369 = vpow2.f32 %v861_v12  ;;  %v846_v9 = vsub.f32 %v1667_v7, %v816_v50 }
 0x261   :  { %1002 = vperm.xlu1 %1334, %v805_v46  }
 0x262   :  { %v818_v58 = vpop.xlane.xlu1 %817 }
 0x263   :  { %v847_v52 = vsub.f32 %v1675_v13, %v818_v58 }
 0x265   :  { %v865_v55 = vmul.f32 1.442695, %v847_v52  ;;  %1012 = vperm.xlu1 %1334, %v807_v2  }
 0x266   :  { %v820_v59 = vpop.xlane.xlu1 %819 }
 0x267   :  { %1371 = vpow2.f32 %v865_v55  ;;  %v848_v37 = vsub.f32 %v1683_v20, %v820_v59 }
 0x269   :  { %1022 = vperm.xlu1 %1334, %v809_v11   ;;  %v1964_v36 = vpop.eup %1369  ;;  %v867_v48 = vmul.f32 1.442695, %v848_v37 }
 0x26a   :  { %v822_v57 = vpop.xlane.xlu0 %821 }
 0x26b   :  { %v849_v16 = vsub.f32 %v1693_v27, %v822_v57 }
 0x26d   :  { %v869_v1 = vmul.f32 1.442695, %v849_v16 }
 0x26e   :  { %v824_v21 = vpop.xlane.xlu1 %823 }
 0x26f   :  { %1373 = vpow2.f32 %v869_v1 }
 0x270   :  { %893 = vadd.xlane.f32.xlu0 %v1964_v36 }
 0x271   :  { %v1968_v3 = vpop.eup %1371 }
 0x272   :  { %v826_v0 = vpop.xlane.xlu0 %825 }
 0x273   :  { %v851_v13 = vsub.f32 %v1761_v62, %v826_v0  ;;  %v863_v62 = vmul.f32 1.442695, %v846_v9 }
 0x274   :  { %897 = vadd.xlane.f32.xlu0 %v1968_v3 }
 0x275   :  { %v873_v51 = vmul.f32 1.442695, %v851_v13 }
 0x276   :  { %v828_v7 = vpop.xlane.xlu1 %827 }
 0x277   :  { %1375 = vpow2.f32 %v873_v51  ;;  %v852_v60 = vsub.f32 %v1787_v23, %v828_v7 }
 0x279   :  { %v1971_v4 = vpop.eup %1373 }
 0x27a   :  { %v830_v6 = vpop.xlane.xlu0 %829  ;;  %901 = vadd.xlane.f32.xlu0 %v1971_v4 }
 0x27b   :  { %v853_v27 = vsub.f32 %v1805_v22, %v830_v6  ;;  %v850_v22 = vsub.f32 %v1725_v41, %v824_v21 }
 0x27d   :  { %v877_v14 = vmul.f32 1.442695, %v853_v27  ;;  %v871_v47 = vmul.f32 1.442695, %v850_v22 }
 0x27e   :  { %v832_v20 = vpop.xlane.xlu1 %831 }
 0x27f   :  { %1377 = vpow2.f32 %v877_v14  ;;  %v854_v58 = vsub.f32 %v1813_v61, %v832_v20 }
 0x280   :  { %1379 = vpow2.f32 %v863_v62  ;;  %v2198_v62 = vlaneseq }
 0x281   :  { %v1976_v18 = vpop.eup %1375  ;;  %v879_v23 = vmul.f32 1.442695, %v854_v58 }
 0x282   :  { %905 = vadd.xlane.f32.xlu0 %v1976_v18  ;;  %v834_v54 = vpop.xlane.xlu0 %833  ;;  %v2028_v37 = vand.u32 127, %v2198_v62 }
 0x283   :  { %v855_v26 = vsub.f32 %v1821_v8, %v834_v54  ;;  %v875_v8 = vmul.f32 1.442695, %v852_v60 }
 0x284   :  { %vm959_vm3 = vcmp.eq.s32.totalorder %v2028_v37, 2 }
 0x285   :  { %v881_v19 = vmul.f32 1.442695, %v855_v26 }
 0x286   :  { %v836_v52 = vpop.xlane.xlu1 %835 }
 0x287   :  { %1381 = vpow2.f32 %v881_v19  ;;  %v856_v55 = vsub.f32 %v1829_v15, %v836_v52 }
 0x288   :  { %1383 = vpow2.f32 %v867_v48 }
 0x289   :  { %v1982_v38 = vpop.eup %1377  ;;  %1385 = vpow2.f32 %v871_v47  ;;  %v883_v57 = vmul.f32 1.442695, %v856_v55 }
 0x28a   :  { %909 = vadd.xlane.f32.xlu0 %v1982_v38  ;;  %v838_v33 = vpop.xlane.xlu0 %837  ;;  %v1988_v12 = vpop.eup %1379 }
 0x28b   :  { %v857_v46 = vsub.f32 %v1839_v25, %v838_v33 }
 0x28d   :  { %v885_v41 = vmul.f32 1.442695, %v857_v46  ;;  %895 = vadd.xlane.f32.xlu1 %v1988_v12 }
 0x28e   :  { %v840_v2 = vpop.xlane.xlu1 %839 }
 0x28f   :  { %1387 = vpow2.f32 %v885_v41  ;;  %v858_v16 = vsub.f32 %v1851_v42, %v840_v2 }
 0x290   :  { %1389 = vpow2.f32 %v875_v8 }
 0x291   :  { %v1991_v50 = vpop.eup %1381  ;;  %1391 = vpow2.f32 %v879_v23  ;;  %v887_v51 = vmul.f32 1.442695, %v858_v16 }
 0x292   :  { %913 = vadd.xlane.f32.xlu0 %v1991_v50  ;;  %v842_v25 = vpop.xlane.xlu0 %841  ;;  %v1995_v11 = vpop.eup %1383 }
 0x293   :  { %v859_v61 = vsub.f32 %v1865_v56, %v842_v25  ;;  %899 = vadd.xlane.f32.xlu1 %v1995_v11  ;;  %v2000_v13 = vpop.eup %1385 }
 0x295   :  { %v889_v1 = vmul.f32 1.442695, %v859_v61 }
 0x296   :  { %v844_v0 = vpop.xlane.xlu1 %843 }
 0x297   :  { %1393 = vpow2.f32 %v889_v1  ;;  %903 = vadd.xlane.f32.xlu1 %v2000_v13  ;;  %v860_v6 = vsub.f32 %v1877_v10, %v844_v0 }
 0x298   :  { %1395 = vpow2.f32 %v883_v57 }
 0x299   :  { %v2003_v15 = vpop.eup %1387  ;;  %1397 = vpow2.f32 %v887_v51  ;;  %v891_v42 = vmul.f32 1.442695, %v860_v6 }
 0x29a   :  { %917 = vadd.xlane.f32.xlu0 %v2003_v15  ;;  %v2007_v56 = vpop.eup %1389 }
 0x29b   :  { %907 = vadd.xlane.f32.xlu1 %v2007_v56  ;;  %v2010_v27 = vpop.eup %1391  ;;  %1399 = vpow2.f32 %v891_v42 }
 0x29f   :  { %911 = vadd.xlane.f32.xlu1 %v2010_v27 }
 0x2a1   :  { %v2013_v9 = vpop.eup %1393 }
 0x2a2   :  { %921 = vadd.xlane.f32.xlu0 %v2013_v9  ;;  %v2016_v14 = vpop.eup %1395 }
 0x2a3   :  { %915 = vadd.xlane.f32.xlu1 %v2016_v14  ;;  %v2019_v10 = vpop.eup %1397 }
 0x2a5   :  { %v2022_v59 = vpop.eup %1399 }
 0x2a7   :  { %919 = vadd.xlane.f32.xlu1 %v2019_v10 }
 0x2ab   :  { %923 = vadd.xlane.f32.xlu1 %v2022_v59 }
 0x2b8   :  { %1037 = vperm.xlu0 %1333, %v1949_v17  }
 0x2bc   :  { %1032 = vperm.xlu1 %1334, %v1952_v43  }
 0x2c4   :  { %v968_v21 = vpop.permute.xlu1 %967  ;;  %v963_v54 = vpop.permute.xlu0 %962 }
 0x2c5   :  { %v1041_v26 = vsel %vm959_vm3, %v968_v21, %v1696_v29  ;;  %v1040_v48 = vsel %vm959_vm3, %v963_v54, %v1702_v30 }
 0x2c6   :  { %1089 = vst [vmem:[%s2196_s5 + $0x28] sm:$0xff] %v1041_v26  ;;  %1088 = vst [vmem:[%s2196_s5 + $0x10] sm:$0xff] %v1040_v48 }
 0x2c8   :  { %v973_v17 = vpop.permute.xlu1 %972  ;;  %v1008_v43 = vpop.permute.xlu0 %1007 }
 0x2c9   :  { %v1042_v22 = vsel %vm959_vm3, %v973_v17, %v1722_v40  ;;  %v1049_v29 = vsel %vm959_vm3, %v1008_v43, %v1730_v44 }
 0x2ca   :  { %1090 = vst [vmem:[%s2196_s5 + $0x40] sm:$0xff] %v1042_v22  ;;  %1097 = vst [vmem:[%s2196_s5 + $0xe8] sm:$0xff] %v1049_v29 }
 0x2cc   :  { %v978_v30 = vpop.permute.xlu1 %977  ;;  %v1018_v19 = vpop.permute.xlu0 %1017 }
 0x2cd   :  { %v1043_v7 = vsel %vm959_vm3, %v978_v30, %v1719_v39  ;;  %v1051_v40 = vsel %vm959_vm3, %v1018_v19, %v1745_v49 }
 0x2ce   :  { %1091 = vst [vmem:[%s2196_s5 + $0x58] sm:$0xff] %v1043_v7  ;;  %1099 = vst [vmem:[%s2196_s5 + $0x118] sm:$0xff] %v1051_v40 }
 0x2d0   :  { %v983_v44 = vpop.permute.xlu1 %982  ;;  %v1028_v47 = vpop.permute.xlu0 %1027 }
 0x2d1   :  { %v1044_v60 = vsel %vm959_vm3, %v983_v44, %v1708_v32  ;;  %v1053_v39 = vsel %vm959_vm3, %v1028_v47, %v1764_v63 }
 0x2d2   :  { %1092 = vst [vmem:[%s2196_s5 + $0x70] sm:$0xff] %v1044_v60  ;;  %1101 = vst [vmem:[%s2196_s5 + $0x148] sm:$0xff] %v1053_v39 }
 0x2d4   :  { %v988_v49 = vpop.permute.xlu1 %987 }
 0x2d5   :  { %v1045_v20 = vsel %vm959_vm3, %v988_v49, %v1705_v31 }
 0x2d6   :  { %1093 = vst [vmem:[%s2196_s5 + $0x88] sm:$0xff] %v1045_v20 }
 0x2d8   :  { %v993_v32 = vpop.permute.xlu1 %992 }
 0x2d9   :  { %v1046_v63 = vsel %vm959_vm3, %v993_v32, %v1715_v35 }
 0x2da   :  { %1094 = vst [vmem:[%s2196_s5 + $0xa0] sm:$0xff] %v1046_v63 }
 0x2dc   :  { %v998_v33 = vpop.permute.xlu1 %997 }
 0x2dd   :  { %v1047_v46 = vsel %vm959_vm3, %v998_v33, %v1712_v34 }
 0x2de   :  { %1095 = vst [vmem:[%s2196_s5 + $0xb8] sm:$0xff] %v1047_v46 }
 0x2e0   :  { %v1003_v31 = vpop.permute.xlu1 %1002 }
 0x2e1   :  { %v1048_v8 = vsel %vm959_vm3, %v1003_v31, %v1733_v45 }
 0x2e2   :  { %1096 = vst [vmem:[%s2196_s5 + $0xd0] sm:$0xff] %v1048_v8 }
 0x2e4   :  { %v1013_v35 = vpop.permute.xlu1 %1012 }
 0x2e5   :  { %v1050_v58 = vsel %vm959_vm3, %v1013_v35, %v1753_v53 }
 0x2e6   :  { %1098 = vst [vmem:[%s2196_s5 + $0x100] sm:$0xff] %v1050_v58 }
 0x2e8   :  { %v1023_v34 = vpop.permute.xlu1 %1022 }
 0x2e9   :  { %v1052_v41 = vsel %vm959_vm3, %v1023_v34, %v1774_v5 }
 0x2ea   :  { %1100 = vst [vmem:[%s2196_s5 + $0x130] sm:$0xff] %v1052_v41 }
 0x2fd   :  { %v894_v45 = vpop.xlane.xlu0 %893 }
 0x2fe   :  { %1401 = vrcp.f32 %v894_v45 }
 0x301   :  { %v898_v52 = vpop.xlane.xlu0 %897 }
 0x302   :  { %1403 = vrcp.f32 %v898_v52 }
 0x307   :  { %v902_v23 = vpop.xlane.xlu0 %901 }
 0x308   :  { %1405 = vrcp.f32 %v902_v23  ;;  %v1402_v53 = vpop.eup %1401 }
 0x309   :  { %v941_v55 = vmul.f32 %v1402_v53, %v1964_v36 }
 0x30b   :  { %1072 = vst [vmem:[%s2196_s5 + $0x8] sm:$0xff] %v941_v55 }
 0x30c   :  { %v1404_v2 = vpop.eup %1403 }
 0x30d   :  { %v943_v5 = vmul.f32 %v1404_v2, %v1968_v3 }
 0x30f   :  { %v906_v25 = vpop.xlane.xlu0 %905  ;;  %1074 = vst [vmem:[%s2196_s5 + $0x38] sm:$0xff] %v943_v5 }
 0x310   :  { %1407 = vrcp.f32 %v906_v25 }
 0x312   :  { %v1406_v61 = vpop.eup %1405 }
 0x313   :  { %v945_v57 = vmul.f32 %v1406_v61, %v1971_v4 }
 0x315   :  { %1076 = vst [vmem:[%s2196_s5 + $0x68] sm:$0xff] %v945_v57 }
 0x317   :  { %v910_v36 = vpop.xlane.xlu0 %909 }
 0x318   :  { %1409 = vrcp.f32 %v910_v36 }
 0x31a   :  { %v1408_v16 = vpop.eup %1407  ;;  %v896_v3 = vpop.xlane.xlu1 %895 }
 0x31b   :  { %v947_v1 = vmul.f32 %v1408_v16, %v1976_v18  ;;  %1411 = vrcp.f32 %v896_v3 }
 0x31d   :  { %1078 = vst [vmem:[%s2196_s5 + $0x98] sm:$0xff] %v947_v1 }
 0x31f   :  { %v914_v0 = vpop.xlane.xlu0 %913 }
 0x320   :  { %1413 = vrcp.f32 %v914_v0  ;;  %v900_v51 = vpop.xlane.xlu1 %899 }
 0x321   :  { %1415 = vrcp.f32 %v900_v51 }
 0x322   :  { %v1410_v6 = vpop.eup %1409 }
 0x323   :  { %v949_v4 = vmul.f32 %v1410_v6, %v1982_v38 }
 0x324   :  { %v904_v42 = vpop.xlane.xlu1 %903 }
 0x325   :  { %1080 = vst [vmem:[%s2196_s5 + $0xc8] sm:$0xff] %v949_v4  ;;  %1417 = vrcp.f32 %v904_v42  ;;  %v1412_v62 = vpop.eup %1411 }
 0x326   :  { %v942_v21 = vmul.f32 %v1412_v62, %v1988_v12 }
 0x327   :  { %v918_v18 = vpop.xlane.xlu0 %917 }
 0x328   :  { %1419 = vrcp.f32 %v918_v18  ;;  %v908_v54 = vpop.xlane.xlu1 %907  ;;  %1073 = vst [vmem:[%s2196_s5 + $0x20] sm:$0xff] %v942_v21 }
 0x329   :  { %1421 = vrcp.f32 %v908_v54 }
 0x32a   :  { %v1414_v26 = vpop.eup %1413 }
 0x32b   :  { %v951_v38 = vmul.f32 %v1414_v26, %v1991_v50  ;;  %v1416_v48 = vpop.eup %1415 }
 0x32c   :  { %v944_v17 = vmul.f32 %v1416_v48, %v1995_v11  ;;  %v912_v43 = vpop.xlane.xlu1 %911 }
 0x32d   :  { %1082 = vst [vmem:[%s2196_s5 + $0xf8] sm:$0xff] %v951_v38  ;;  %1423 = vrcp.f32 %v912_v43 }
 0x32e   :  { %1075 = vst [vmem:[%s2196_s5 + $0x50] sm:$0xff] %v944_v17 }
 0x32f   :  { %v922_v12 = vpop.xlane.xlu0 %921  ;;  %v1418_v22 = vpop.eup %1417 }
 0x330   :  { %1425 = vrcp.f32 %v922_v12  ;;  %v946_v29 = vmul.f32 %v1418_v22, %v2000_v13  ;;  %v916_v30 = vpop.xlane.xlu1 %915 }
 0x331   :  { %1427 = vrcp.f32 %v916_v30 }
 0x332   :  { %v1420_v50 = vpop.eup %1419  ;;  %1077 = vst [vmem:[%s2196_s5 + $0x80] sm:$0xff] %v946_v29 }
 0x333   :  { %v953_v11 = vmul.f32 %v1420_v50, %v2003_v15  ;;  %v1422_v19 = vpop.eup %1421 }
 0x334   :  { %v948_v7 = vmul.f32 %v1422_v19, %v2007_v56  ;;  %v920_v40 = vpop.xlane.xlu1 %919 }
 0x335   :  { %1084 = vst [vmem:[%s2196_s5 + $0x128] sm:$0xff] %v953_v11  ;;  %1429 = vrcp.f32 %v920_v40 }
 0x336   :  { %1079 = vst [vmem:[%s2196_s5 + $0xb0] sm:$0xff] %v948_v7 }
 0x337   :  { %v1038_v13 = vpop.permute.xlu0 %1037  ;;  %v1424_v44 = vpop.eup %1423 }
 0x338   :  { %v1055_v47 = vsel %vm959_vm3, %v1038_v13, %v1790_v24  ;;  %v950_v15 = vmul.f32 %v1424_v44, %v2010_v27  ;;  %v924_v60 = vpop.xlane.xlu1 %923 }
 0x339   :  { %1103 = vst [vmem:[%s2196_s5 + $0x178] sm:$0xff] %v1055_v47  ;;  %1431 = vrcp.f32 %v924_v60 }
 0x33a   :  { %v1426_v56 = vpop.eup %1425  ;;  %1081 = vst [vmem:[%s2196_s5 + $0xe0] sm:$0xff] %v950_v15 }
 0x33b   :  { %v955_v39 = vmul.f32 %v1426_v56, %v2013_v9  ;;  %v1428_v49 = vpop.eup %1427 }
 0x33c   :  { %v952_v20 = vmul.f32 %v1428_v49, %v2016_v14  ;;  %v1033_v24 = vpop.permute.xlu1 %1032 }
 0x33d   :  { %1086 = vst [vmem:[%s2196_s5 + $0x158] sm:$0xff] %v955_v39  ;;  %v1054_v27 = vsel %vm959_vm3, %v1033_v24, %v1796_v28 }
 0x33e   :  { %1083 = vst [vmem:[%s2196_s5 + $0x110] sm:$0xff] %v952_v20  ;;  %1102 = vst [vmem:[%s2196_s5 + $0x160] sm:$0xff] %v1054_v27 }
 0x33f   :  { %v1430_v9 = vpop.eup %1429 }
 0x340   :  { %v954_v14 = vmul.f32 %v1430_v9, %v2019_v10 }
 0x342   :  { %1085 = vst [vmem:[%s2196_s5 + $0x140] sm:$0xff] %v954_v14 }
 0x343   :  { %v1432_v32 = vpop.eup %1431 }
 0x344   :  { %v956_v63 = vmul.f32 %v1432_v32, %v2022_v59 }
 0x346   :  { %1087 = vst [vmem:[%s2196_s5 + $0x170] sm:$0xff] %v956_v63 }
 0x347   :  { %1108 = vsyncpa [#allocation3], 1 }

</bundles_post_ra>
